<compile_context>
chip_gen: v5e
topology: v5e:2x2
jax: 0.10.0
libtpu: 0.0.40
codegen_flags: <defaults>
</compile_context>

<pallas_src>
import functools

import jax
import jax.numpy as jnp
from jax.experimental import pallas as pl
from jax.experimental.pallas import tpu as pltpu


def _fused_conv_kernel(x_ref, w_ref, b_ref, o_ref, *, bblk, tp, t_valid):
    """One batch-block per grid step.

    x_ref: (Bblk*Tp, KDp) bf16  im2col windows (flattened batch x padded time)
    w_ref: (KDp, C)       bf16  flattened + fused conv filter weights
    b_ref: (1, C)         f32   fused bias
    o_ref: (Bblk, C)      f32   max-over-time pooled, ReLU'd conv output
    """
    # Single big MXU matmul, f32 accumulate.
    s = jnp.dot(x_ref[...], w_ref[...],
                preferred_element_type=jnp.float32)          # (Bblk*Tp, C)
    c = s.shape[-1]
    s = s.reshape(bblk, tp, c)                                # tile-aligned split

    if tp > t_valid:
        # Mask padded time rows so they can never win the max (bias may be > 0).
        t_idx = jax.lax.broadcasted_iota(jnp.int32, (bblk, tp, c), 1)
        s = jnp.where(t_idx < t_valid, s, jnp.finfo(jnp.float32).min)

    m = jnp.max(s, axis=1)                                    # (Bblk, C), XLU reduce
    # bias + ReLU after the pool: max_t(relu(s_t + b)) == relu(max_t(s_t) + b)
    o_ref[...] = jnp.maximum(m + b_ref[...], 0.0).astype(o_ref.dtype)


def conv_group(x, w_cat, b_cat, K):
    """Fused conv branch group (all branches share the same K).

    x:     (B, L, D) f32
    w_cat: (C, K, D) f32   channel-concatenated filters of the group
    b_cat: (C,)      f32
    returns (B, C) f32
    """
    B, L, D = x.shape
    C = w_cat.shape[0]
    T = L - K + 1                         # valid conv output length
    assert T >= 1
    Tp = -(-T // 8) * 8                   # pad time to a sublane multiple
    KD = K * D
    KDp = -(-KD // 128) * 128             # pad contraction to a lane multiple

    # im2col (JAX glue). Fine while L*D is small.
    # TODO(synk): for large L, build the K shifted windows in-kernel from a
    # (Bblk, L, D) block instead of materializing K copies through HBM.
    cols = jnp.stack([x[:, k:k + T, :] for k in range(K)], axis=2)
    cols = cols.reshape(B, T, KD)
    cols = jnp.pad(cols, ((0, 0), (0, Tp - T), (0, KDp - KD)))

    # Batch blocking: fill the MXU M dimension (~512 rows) and amortize the
    # per-grid-step overhead.  Keep Bblk a multiple of 8 (or == B) so the
    # output block stays sublane-aligned.
    rows_target = max(1, 512 // Tp)
    if B <= rows_target:
        bblk = B
    else:
        bblk = max(8, (rows_target // 8) * 8)
    Bp = -(-B // bblk) * bblk
    if Bp > B:
        cols = jnp.pad(cols, ((0, Bp - B), (0, 0), (0, 0)))

    # bf16 MXU operands, f32 accumulation inside the kernel.
    cols_flat = cols.reshape(Bp * Tp, KDp).astype(jnp.bfloat16)
    wm = jnp.pad(w_cat.reshape(C, KD).T,
                 ((0, KDp - KD), (0, 0))).astype(jnp.bfloat16)   # (KDp, C)
    bm = b_cat.reshape(1, C).astype(jnp.float32)

    kernel = functools.partial(_fused_conv_kernel, bblk=bblk, tp=Tp, t_valid=T)
    out = pl.pallas_call(
        kernel,
        out_shape=jax.ShapeDtypeStruct((Bp, C), jnp.float32),
        grid_spec=pl.GridSpec(
            grid=(Bp // bblk,),
            in_specs=[
                pl.BlockSpec((bblk * Tp, KDp), lambda i: (i, 0)),
                pl.BlockSpec((KDp, C), lambda i: (0, 0)),
                pl.BlockSpec((1, C), lambda i: (0, 0)),
            ],
            out_specs=pl.BlockSpec((bblk, C), lambda i: (i, 0)),
        ),
        compiler_params=pltpu.CompilerParams(
            # Blocks are small (<< default scoped VMEM even on v7x's 64 MiB);
            # batch axis is parallel so multiple TensorCores can share it.
            dimension_semantics=("parallel",)),
    )(cols_flat, wm, bm)
    return out[:B]


class CNNPallas:
    """Pallas port of the PyTorch CNN module (inference)."""

    def __init__(self, embedding_dim, convs=(5, 5, 3, 3), out_channels=128,
                 init_range=0.1, key=None):
        self.convs = tuple(convs)
        self.out_channels = out_channels
        if key is None:
            key = jax.random.PRNGKey(0)
        self.weights = []
        self.biases = []
        for K in self.convs:
            key, wk, bk = jax.random.split(key, 3)
            # deterministic synthetic init (uniform in [-init_range, init_range])
            w = jax.random.uniform(wk, (out_channels, K, embedding_dim),
                                   jnp.float32, -init_range, init_range)
            b = jax.random.uniform(bk, (out_channels,),
                                   jnp.float32, -init_range, init_range)
            self.weights.append(w)
            self.biases.append(b)

    def __call__(self, x):
        # x: (B, L, D); PyTorch does x.unsqueeze(1) to (B,1,L,D) — the size-1
        # channel axis is folded into the im2col.
        # Fuse *consecutive same-K* branches along the output-channel axis so
        # the concat ordering matches the PyTorch module exactly.
        outs = []
        i, n = 0, len(self.convs)
        while i < n:
            j = i
            while j < n and self.convs[j] == self.convs[i]:
                j += 1
            w_cat = jnp.concatenate(self.weights[i:j], axis=0)   # (128*(j-i), K, D)
            b_cat = jnp.concatenate(self.biases[i:j], axis=0)
            outs.append(conv_group(x, w_cat, b_cat, self.convs[i]))
            i = j
        out = jnp.concatenate(outs, axis=1)                      # (B, 128*len(convs))
        # TODO(synk): nn.Dropout(p) is identity in eval mode; training-mode
        # stochastic masking not implemented here.
        return out


def _reference(x, weights, biases, convs):
    """Pure-JAX reference of the PyTorch forward (bf16 operands emulated)."""
    B, L, D = x.shape
    outs = []
    for w, b, K in zip(weights, biases, convs):
        T = L - K + 1
        cols = jnp.stack([x[:, k:k + T, :] for k in range(K)], axis=2)
        cols = cols.reshape(B, T, K * D)
        wm = w.reshape(w.shape[0], K * D)
        s = jnp.einsum('btf,cf->btc',
                       cols.astype(jnp.bfloat16).astype(jnp.float32),
                       wm.astype(jnp.bfloat16).astype(jnp.float32)) + b
        s = jnp.maximum(s, 0.0)
        outs.append(jnp.max(s, axis=1))
    return jnp.concatenate(outs, axis=1)


if __name__ == "__main__":
    B, L, D = 2, 16, 32          # batch, seq_len, embedding_dim
    key = jax.random.PRNGKey(0)
    kx, kp = jax.random.split(key)
    x = jax.random.normal(kx, (B, L, D), jnp.float32)

    model = CNNPallas(embedding_dim=D, convs=(5, 5, 3, 3), key=kp)
    out = jax.block_until_ready(model(x))

    assert out.shape == (B, 128 * 4), out.shape

    ref = _reference(x, model.weights, model.biases, model.convs)
    err = float(jnp.max(jnp.abs(out - ref)))
    assert jnp.allclose(out, ref, atol=5e-3, rtol=5e-3), err

    print("KERNEL_OK")
</pallas_src>

<mosaic_0001>
module attributes {stable_mosaic.version = 11 : i64} {
  func.func @_fused_conv_kernel(%arg0: i32, %arg1: memref<32x256xbf16, #tpu.memory_space<vmem>>, %arg2: memref<256x256xbf16, #tpu.memory_space<vmem>>, %arg3: memref<1x256xf32, #tpu.memory_space<vmem>>, %arg4: memref<2x256xf32, #tpu.memory_space<vmem>>) attributes {dimension_semantics = [#tpu.dimension_semantics<parallel>], iteration_bounds = array<i64: 1>, scalar_prefetch = 0 : i64, scratch_operands = 0 : i64, tpu.core_type = #tpu.core_type<tc>, window_params = [{transform_indices = @transform_0, window_bounds = array<i64: 32, 256>}, {pipeline_mode = #tpu.pipeline_mode<synchronous>, transform_indices = @transform_1, window_bounds = array<i64: 256, 256>}, {pipeline_mode = #tpu.pipeline_mode<synchronous>, transform_indices = @transform_2, window_bounds = array<i64: 1, 256>}, {transform_indices = @transform_3, window_bounds = array<i64: 2, 256>}]} {
    %c0 = arith.constant 0 : index
    %c0_0 = arith.constant 0 : index
    %0 = vector.load %arg1[%c0, %c0_0] : memref<32x256xbf16, #tpu.memory_space<vmem>>, vector<32x256xbf16>
    %c0_1 = arith.constant 0 : index
    %c0_2 = arith.constant 0 : index
    %1 = vector.load %arg2[%c0_1, %c0_2] : memref<256x256xbf16, #tpu.memory_space<vmem>>, vector<256x256xbf16>
    %cst = arith.constant dense<0.000000e+00> : vector<32x256xf32>
    %2 = tpu.matmul %0, %1, %cst {dimension_numbers = #tpu.dot_dimension_numbers<[1], [0], [0], [1], [0, 0, 1, 1], [], []>} : vector<32x256xbf16>, vector<256x256xbf16>, vector<32x256xf32> -> vector<32x256xf32>
    %3 = vector.shape_cast %2 : vector<32x256xf32> to vector<2x16x256xf32>
    %4 = tpu.iota {dimensions = array<i32: 1>} : vector<2x16x256xi32>
    %c12_i32 = arith.constant 12 : i32
    %5 = vector.broadcast %c12_i32 : i32 to vector<2x16x256xi32>
    %6 = arith.cmpi slt, %4, %5 : vector<2x16x256xi32>
    %cst_3 = arith.constant -3.40282347E+38 : f32
    %7 = vector.broadcast %cst_3 : f32 to vector<2x16x256xf32>
    %8 = arith.select %6, %3, %7 : vector<2x16x256xi1>, vector<2x16x256xf32>
    %cst_4 = arith.constant dense<0xFF800000> : vector<2x256xf32>
    %9 = vector.multi_reduction <maximumf>, %8, %cst_4 [1] : vector<2x16x256xf32> to vector<2x256xf32>
    %c0_5 = arith.constant 0 : index
    %c0_6 = arith.constant 0 : index
    %10 = vector.load %arg3[%c0_5, %c0_6] : memref<1x256xf32, #tpu.memory_space<vmem>>, vector<1x256xf32>
    %11 = vector.broadcast %10 : vector<1x256xf32> to vector<2x256xf32>
    %12 = arith.addf %9, %11 : vector<2x256xf32>
    %cst_7 = arith.constant 0.000000e+00 : f32
    %13 = vector.broadcast %cst_7 : f32 to vector<2x256xf32>
    %14 = arith.maximumf %12, %13 : vector<2x256xf32>
    %c0_8 = arith.constant 0 : index
    %c0_9 = arith.constant 0 : index
    %15 = vector.load %arg4[%c0_8, %c0_9] : memref<2x256xf32, #tpu.memory_space<vmem>>, vector<2x256xf32>
    tpu.vector_store %arg4[%c0_8, %c0_9], %14 {strides = array<i32>} : memref<2x256xf32, #tpu.memory_space<vmem>>, vector<2x256xf32>,
    return
  }
  func.func @transform_0(%arg0: i32) -> (i32, i32) {
    %c0_i32 = arith.constant 0 : i32
    %c0_i32_0 = arith.constant 0 : i32
    return %arg0, %c0_i32 : i32, i32
  }
  func.func @transform_1(%arg0: i32) -> (i32, i32) {
    %c0_i32 = arith.constant 0 : i32
    %c0_i32_0 = arith.constant 0 : i32
    %c0_i32_1 = arith.constant 0 : i32
    return %c0_i32, %c0_i32_0 : i32, i32
  }
  func.func @transform_2(%arg0: i32) -> (i32, i32) {
    %c0_i32 = arith.constant 0 : i32
    %c0_i32_0 = arith.constant 0 : i32
    %c0_i32_1 = arith.constant 0 : i32
    return %c0_i32, %c0_i32_0 : i32, i32
  }
  func.func @transform_3(%arg0: i32) -> (i32, i32) {
    %c0_i32 = arith.constant 0 : i32
    %c0_i32_0 = arith.constant 0 : i32
    return %arg0, %c0_i32 : i32, i32
  }
}

</mosaic_0001>

<bundles_post_ra>
// kernel: tpu_custom_call.1
= control target key start
LH: loop header
LB: loop body
LE: loop exit
PB: predicated region body
PF: predicated region fallthrough
CT: control target
= control target key end

     0   :  { %8 = vsyncpa [#allocation3], 0  ;;  %s779_s0 = inlined_call_operand.hbm [shape: bf16[32,256], index: 0, kind: input, shape index: {}]   ;;  %s780_s1 = inlined_call_operand.hbm [shape: bf16[256,256], index: 1, kind: input, shape index: {}]   ;;  %s781_s2 = inlined_call_operand.hbm [shape: f32[1,256], index: 2, kind: input, shape index: {}]   ;;  %s782_s3 = inlined_call_operand.hbm [shape: f32[2,256], index: 3, kind: output, shape index: {}]  }
   0x1   :  { %9 = vsyncpa [#allocation6], 0 }
   0x2   :  { %10 = vsyncpa [#allocation4], 0  ;;  %s28_s14 = sshll.u32 %s780_s1, 4  ;;  %s737_s15 = smov [#allocation5]   ;;  %s29_s14 = int_to_ptr.hbm [resolvable:$true] %s28_s14 }
   0x3   :  { %s30_s16 = sshll.u32 %s737_s15, 4  ;;  %s15_s19 = sshll.u32 %s779_s0, 4  ;;  %s31_s16 = int_to_ptr.vmem [resolvable:$true] %s30_s16  ;;  %s16_s19 = int_to_ptr.hbm [resolvable:$true] %s15_s19 }
   0x4   :  { %s738_s20 = smov 128   ;;  %s739_s21 = smov 8  }
   0x5   :  { %36 = dma.hbm_to_vmem [thread:$0]  %s29_s14, 4096, %s31_s16, [#allocation6], %s738_s20, %s738_s20, %s739_s21  }
   0x6   :  { %s740_s22 = smov [#allocation2]   ;;  %s42_s26 = sshll.u32 %s781_s2, 4  ;;  %s43_s26 = int_to_ptr.hbm [resolvable:$true] %s42_s26 }
   0x7   :  { %s17_s23 = sshll.u32 %s740_s22, 4  ;;  %s741_s1 = smov [#allocation7]   ;;  %s18_s23 = int_to_ptr.vmem [resolvable:$true] %s17_s23 }
   0x8   :  { %23 = dma.hbm_to_vmem [thread:$0]  %s16_s19, 512, %s18_s23, [#allocation3], %s738_s20, %s738_s20, %s739_s21  }
   0x9   :  { %s44_s27 = sshll.u32 %s741_s1, 4  ;;  %s45_s27 = int_to_ptr.vmem [resolvable:$true] %s44_s27 }
   0xa   :  { %47 = dma.hbm_to_vmem [thread:$0]  %s43_s26, 32, %s45_s27, [#allocation6]  }
   0xb   :  { %731 = dma.done.wait [#allocation3], 512  }
   0xc   :  { %732 = vsyncadd [#allocation3], 4294966784 }
   0xd   :  { %733 = dma.done.wait [#allocation6], 4128  }
   0xe   :  { %734 = vsyncadd [#allocation6], 4294963168  ;;  %v523_v0 = vld [vmem:[#allocation5 + $0x70] sm:$0xf]  ;;  %v612_v1 = vld [vmem:[#allocation5 + $0x74] sm:$0xf0] }
   0xf   :  { %v587_v2 = vld [vmem:[#allocation5 + $0xf0] sm:$0xf]  ;;  %v524_v3 = vor.u32 %v612_v1, %v523_v0  ;;  %v628_v4 = vld [vmem:[#allocation5 + $0xf4] sm:$0xf0]  ;;  %v611_v5 = vld [vmem:[#allocation5 + $0x74] sm:$0xf] }
  0x10   :  { %v525_v6 = vld [vmem:[#allocation5 + $0x78] sm:$0xf0]  ;;  %v588_v7 = vor.u32 %v628_v4, %v587_v2  ;;  %v627_v9 = vld [vmem:[#allocation5 + $0xf4] sm:$0xf]  ;;  %v515_v11 = vld [vmem:[#allocation5 + $0x60] sm:$0xf] }
  0x11   :  { %v528_v8 = vor.u32 %v611_v5, %v525_v6  ;;  %v589_v10 = vld [vmem:[#allocation5 + $0xf8] sm:$0xf0]  ;;  %276 = vmatpush.bf16.msra.mxu0 %v524_v3  ;;  %v610_v13 = vld [vmem:[#allocation5 + $0x64] sm:$0xf0]  ;;  %v579_v14 = vld [vmem:[#allocation5 + $0xe0] sm:$0xf] }
  0x12   :  { %v592_v12 = vor.u32 %v627_v9, %v589_v10  ;;  %v626_v15 = vld [vmem:[#allocation5 + $0xe4] sm:$0xf0]  ;;  %295 = vmatpush.bf16.msra.mxu1 %v588_v7  ;;  %v516_v16 = vor.u32 %v610_v13, %v515_v11  ;;  %v609_v18 = vld [vmem:[#allocation5 + $0x64] sm:$0xf]  ;;  %v517_v19 = vld [vmem:[#allocation5 + $0x68] sm:$0xf0] }
  0x13   :  { %314 = vmatpush.bf16.msra.mxu2 %v528_v8  ;;  %v580_v17 = vor.u32 %v626_v15, %v579_v14  ;;  %v625_v20 = vld [vmem:[#allocation5 + $0xe4] sm:$0xf]  ;;  %v520_v21 = vor.u32 %v609_v18, %v517_v19  ;;  %v581_v22 = vld [vmem:[#allocation5 + $0xe8] sm:$0xf0]  ;;  %v507_v23 = vld [vmem:[#allocation5 + $0x50] sm:$0xf] }
  0x14   :  { %333 = vmatpush.bf16.msra.mxu3 %v592_v12  ;;  %v608_v24 = vld [vmem:[#allocation5 + $0x54] sm:$0xf0]  ;;  %v584_v25 = vor.u32 %v625_v20, %v581_v22  ;;  %v571_v26 = vld [vmem:[#allocation5 + $0xd0] sm:$0xf]  ;;  %v607_v28 = vld [vmem:[#allocation5 + $0x54] sm:$0xf] }
  0x15   :  { %v624_v27 = vld [vmem:[#allocation5 + $0xd4] sm:$0xf0]  ;;  %277 = vmatpush.bf16.msra.mxu0 %v516_v16  ;;  %v508_v29 = vor.u32 %v608_v24, %v507_v23  ;;  %v509_v30 = vld [vmem:[#allocation5 + $0x58] sm:$0xf0]  ;;  %v623_v31 = vld [vmem:[#allocation5 + $0xd4] sm:$0xf] }
  0x16   :  { %v573_v32 = vld [vmem:[#allocation5 + $0xd8] sm:$0xf0]  ;;  %296 = vmatpush.bf16.msra.mxu1 %v580_v17  ;;  %v572_v33 = vor.u32 %v624_v27, %v571_v26  ;;  %v512_v34 = vor.u32 %v607_v28, %v509_v30  ;;  %v499_v35 = vld [vmem:[#allocation5 + $0x40] sm:$0xf]  ;;  %v606_v36 = vld [vmem:[#allocation5 + $0x44] sm:$0xf0] }
  0x17   :  { %315 = vmatpush.bf16.msra.mxu2 %v520_v21  ;;  %v563_v37 = vld [vmem:[#allocation5 + $0xc0] sm:$0xf]  ;;  %v576_v38 = vor.u32 %v623_v31, %v573_v32  ;;  %v622_v39 = vld [vmem:[#allocation5 + $0xc4] sm:$0xf0]  ;;  %v605_v40 = vld [vmem:[#allocation5 + $0x44] sm:$0xf]  ;;  %v500_v44 = vor.u32 %v606_v36, %v499_v35 }
  0x18   :  { %334 = vmatpush.bf16.msra.mxu3 %v584_v25  ;;  %v501_v41 = vld [vmem:[#allocation5 + $0x48] sm:$0xf0]  ;;  %v621_v42 = vld [vmem:[#allocation5 + $0xc4] sm:$0xf]  ;;  %v564_v45 = vor.u32 %v622_v39, %v563_v37  ;;  %v491_v47 = vld [vmem:[#allocation5 + $0x30] sm:$0xf] }
  0x19   :  { %v565_v43 = vld [vmem:[#allocation5 + $0xc8] sm:$0xf0]  ;;  %278 = vmatpush.bf16.msra.mxu0 %v508_v29  ;;  %v504_v46 = vor.u32 %v605_v40, %v501_v41  ;;  %v604_v48 = vld [vmem:[#allocation5 + $0x34] sm:$0xf0]  ;;  %v555_v49 = vld [vmem:[#allocation5 + $0xb0] sm:$0xf] }
  0x1a   :  { %297 = vmatpush.bf16.msra.mxu1 %v572_v33  ;;  %v568_v50 = vor.u32 %v621_v42, %v565_v43  ;;  %v620_v51 = vld [vmem:[#allocation5 + $0xb4] sm:$0xf0]  ;;  %v603_v52 = vld [vmem:[#allocation5 + $0x34] sm:$0xf]  ;;  %v493_v53 = vld [vmem:[#allocation5 + $0x38] sm:$0xf0]  ;;  %v492_v56 = vor.u32 %v604_v48, %v491_v47 }
  0x1b   :  { %316 = vmatpush.bf16.msra.mxu2 %v512_v34  ;;  %v619_v54 = vld [vmem:[#allocation5 + $0xb4] sm:$0xf]  ;;  %v557_v55 = vld [vmem:[#allocation5 + $0xb8] sm:$0xf0]  ;;  %v556_v57 = vor.u32 %v620_v51, %v555_v49  ;;  %v496_v58 = vor.u32 %v603_v52, %v493_v53  ;;  %v483_v59 = vld [vmem:[#allocation5 + $0x20] sm:$0xf] }
  0x1c   :  { %335 = vmatpush.bf16.msra.mxu3 %v576_v38  ;;  %v602_v60 = vld [vmem:[#allocation5 + $0x24] sm:$0xf0]  ;;  %v547_v61 = vld [vmem:[#allocation5 + $0xa0] sm:$0xf]  ;;  %v560_v62 = vor.u32 %v619_v54, %v557_v55  ;;  %v601_v0 = vld [vmem:[#allocation5 + $0x24] sm:$0xf] }
  0x1d   :  { %279 = vmatpush.bf16.msra.mxu0 %v500_v44  ;;  %v618_v63 = vld [vmem:[#allocation5 + $0xa4] sm:$0xf0]  ;;  %v485_v1 = vld [vmem:[#allocation5 + $0x28] sm:$0xf0]  ;;  %v617_v2 = vld [vmem:[#allocation5 + $0xa4] sm:$0xf]  ;;  %v484_v4 = vor.u32 %v602_v60, %v483_v59 }
  0x1e   :  { %298 = vmatpush.bf16.msra.mxu1 %v564_v45  ;;  %v549_v3 = vld [vmem:[#allocation5 + $0xa8] sm:$0xf0]  ;;  %v548_v5 = vor.u32 %v618_v63, %v547_v61  ;;  %v488_v6 = vor.u32 %v601_v0, %v485_v1  ;;  %v475_v7 = vld [vmem:[#allocation5 + $0x10] sm:$0xf]  ;;  %v600_v8 = vld [vmem:[#allocation5 + $0x14] sm:$0xf0] }
  0x1f   :  { %317 = vmatpush.bf16.msra.mxu2 %v504_v46  ;;  %v539_v9 = vld [vmem:[#allocation5 + $0x90] sm:$0xf]  ;;  %v552_v10 = vor.u32 %v617_v2, %v549_v3  ;;  %v616_v11 = vld [vmem:[#allocation5 + $0x94] sm:$0xf0]  ;;  %v599_v12 = vld [vmem:[#allocation5 + $0x14] sm:$0xf]  ;;  %v476_v16 = vor.u32 %v600_v8, %v475_v7  ;;  %v352_v46 = vlaneseq }
  0x20   :  { %336 = vmatpush.bf16.msra.mxu3 %v568_v50  ;;  %v477_v13 = vld [vmem:[#allocation5 + $0x18] sm:$0xf0]  ;;  %v615_v14 = vld [vmem:[#allocation5 + $0x94] sm:$0xf]  ;;  %v540_v17 = vor.u32 %v616_v11, %v539_v9  ;;  %v467_v19 = vld [vmem:[#allocation5] sm:$0xf] }
  0x21   :  { %280 = vmatpush.bf16.msra.mxu0 %v492_v56  ;;  %v541_v15 = vld [vmem:[#allocation5 + $0x98] sm:$0xf0]  ;;  %v480_v18 = vor.u32 %v599_v12, %v477_v13  ;;  %v598_v20 = vld [vmem:[#allocation5 + $0x4] sm:$0xf0]  ;;  %v531_v21 = vld [vmem:[#allocation5 + $0x80] sm:$0xf] }
  0x22   :  { %299 = vmatpush.bf16.msra.mxu1 %v556_v57  ;;  %v544_v22 = vor.u32 %v615_v14, %v541_v15  ;;  %v614_v23 = vld [vmem:[#allocation5 + $0x84] sm:$0xf0]  ;;  %v597_v24 = vld [vmem:[#allocation5 + $0x4] sm:$0xf]  ;;  %v469_v25 = vld [vmem:[#allocation5 + $0x8] sm:$0xf0]  ;;  %v468_v28 = vor.u32 %v598_v20, %v467_v19 }
  0x23   :  { %318 = vmatpush.bf16.msra.mxu2 %v496_v58  ;;  %v613_v26 = vld [vmem:[#allocation5 + $0x84] sm:$0xf]  ;;  %v533_v27 = vld [vmem:[#allocation5 + $0x88] sm:$0xf0]  ;;  %v451_v29 = vld [vmem:[#allocation2] sm:$0xf]  ;;  %v532_v31 = vor.u32 %v614_v23, %v531_v21  ;;  %v472_v32 = vor.u32 %v597_v24, %v469_v25 }
  0x24   :  { %337 = vmatpush.bf16.msra.mxu3 %v560_v62  ;;  %v594_v30 = vld [vmem:[#allocation2 + $0x4] sm:$0xf0]  ;;  %v593_v33 = vld [vmem:[#allocation2 + $0x4] sm:$0xf]  ;;  %v453_v34 = vld [vmem:[#allocation2 + $0x8] sm:$0xf0]  ;;  %v536_v35 = vor.u32 %v613_v26, %v533_v27 }
  0x25   :  { %281 = vmatpush.bf16.msra.mxu0 %v484_v4  ;;  %v452_v36 = vor.u32 %v594_v30, %v451_v29  ;;  %v456_v37 = vor.u32 %v593_v33, %v453_v34  ;;  %v459_v38 = vld [vmem:[#allocation2 + $0x10] sm:$0xf]  ;;  %v596_v39 = vld [vmem:[#allocation2 + $0x14] sm:$0xf0]  ;;  %v595_v40 = vld [vmem:[#allocation2 + $0x14] sm:$0xf] }
  0x26   :  { %300 = vmatpush.bf16.msra.mxu1 %v548_v5  ;;  %v461_v41 = vld [vmem:[#allocation2 + $0x18] sm:$0xf0]  ;;  %v460_v42 = vor.u32 %v596_v39, %v459_v38  ;;  %v353_v51 = vshrl.u32 %v352_v46, 7  ;;  %v393_v30 = vld [vmem:[#allocation7] sm:$0x3]  ;;  %vm413_vm1 = vcmask 1041408  }
  0x27   :  { %319 = vmatpush.bf16.msra.mxu2 %v488_v6  ;;  %v464_v43 = vor.u32 %v595_v40, %v461_v41  ;;  %v395_v41 = vperm.slane %v393_v30, 0  ;;  %vm421_vm2 = vcmask 1041409   ;;  %vm423_vm3 = vcmask 1043459   ;;  %s742_s0 = smov [#allocation8]   ;;  %s438_s30 = sshll.u32 %s782_s3, 4  ;;  %s439_s30 = int_to_ptr.hbm [resolvable:$true] %s438_s30 }
  0x28   :  { %338 = vmatpush.bf16.msra.mxu3 %v552_v10  ;;  %v354_v52 = vadd.s32 8, %v353_v51  ;;  %vm425_vm4 = vcmask 1045509   ;;  %s436_s2 = sshll.u32 %s742_s0, 4  ;;  %vm427_vm5 = vcmask 1047559   ;;  %s437_s2 = int_to_ptr.vmem [resolvable:$true] %s436_s2 }
  0x29   :  { %282 = vmatpush.bf16.msra.mxu0 %v476_v16 }
  0x2a   :  { %301 = vmatpush.bf16.msra.mxu1 %v540_v17  ;;  %vm356_vm0 = vcmp.lt.s32.totalorder %v354_v52, 12 }
  0x2b   :  { %320 = vmatpush.bf16.msra.mxu2 %v480_v18 }
  0x2c   :  { %339 = vmatpush.bf16.msra.mxu3 %v544_v22 }
  0x2d   :  { %283 = vmatpush.bf16.msra.mxu0 %v468_v28 }
  0x2e   :  { %302 = vmatpush.bf16.msra.mxu1 %v532_v31 }
  0x2f   :  { %321 = vmatpush.bf16.msra.mxu2 %v472_v32  ;;  %v396_v32 = vperm.slane %v393_v30, 1 }
  0x30   :  { %340 = vmatpush.bf16.msra.mxu3 %v536_v35  ;;  %284 = vmatmul.bf16.vlgmr.msra.gmra.mxu0 %v452_v36 }
  0x31   :  { %303 = vmatmul.bf16.vlgmr.msra.gmra.mxu1 %v456_v37 }
  0x32   :  { %322 = vmatmul.bf16.vlgmr.msra.gmra.mxu2 %v452_v36 }
  0x33   :  { %341 = vmatmul.bf16.vlgmr.msra.gmra.mxu3 %v456_v37 }
  0x40   :  { %289 = vmatmul.bf16.gmra.mxu0 %v460_v42 }
  0x41   :  { %308 = vmatmul.bf16.gmra.mxu1 %v464_v43 }
  0x42   :  { %327 = vmatmul.bf16.gmra.mxu2 %v460_v42 }
  0x43   :  { %346 = vmatmul.bf16.gmra.mxu3 %v464_v43 }
  0xad   :  { %v285_v44 = vpop.f32.mrf.mxu0 }
  0xae   :  { %v304_v45 = vpop.f32.mrf.mxu1 }
  0xaf   :  { %v305_v61 = vadd.f32 %v304_v45, %v285_v44 }
  0xb5   :  { %v323_v47 = vpop.f32.mrf.mxu2  ;;  %v287_v49 = vpop.f32.mrf.mxu0 }
  0xb6   :  { %v342_v48 = vpop.f32.mrf.mxu3  ;;  %v306_v50 = vpop.f32.mrf.mxu1 }
  0xb7   :  { %v307_v56 = vadd.f32 %v306_v50, %v287_v49  ;;  %v343_v59 = vadd.f32 %v342_v48, %v323_v47 }
  0xb9   :  { %v359_v63 = vsel %vm356_vm0, %v307_v56, -3.4028235e+38 }
  0xba   :  { %v365_v2 = vmax.f32 %v305_v61, %v359_v63 }
  0xbc   :  { %v366_v9 = vrot.slane %v365_v2, 4 }
  0xbd   :  { %v325_v53 = vpop.f32.mrf.mxu2  ;;  %v290_v55 = vpop.f32.mrf.mxu0 }
  0xbe   :  { %v344_v54 = vpop.f32.mrf.mxu3  ;;  %v309_v58 = vpop.f32.mrf.mxu1  ;;  %v367_v15 = vmax.f32 %v365_v2, %v366_v9 }
  0xbf   :  { %v345_v57 = vadd.f32 %v344_v54, %v325_v53  ;;  %v310_v5 = vadd.f32 %v309_v58, %v290_v55 }
  0xc0   :  { %v368_v23 = vrot.slane %v367_v15, 2 }
  0xc1   :  { %v360_v60 = vsel %vm356_vm0, %v345_v57, -3.4028235e+38 }
  0xc2   :  { %v372_v62 = vmax.f32 %v343_v59, %v360_v60  ;;  %v369_v28 = vmax.f32 %v367_v15, %v368_v23 }
  0xc4   :  { %v373_v0 = vrot.slane %v372_v62, 4  ;;  %v370_v35 = vrot.slane %v369_v28, 1 }
  0xc5   :  { %v328_v1 = vpop.f32.mrf.mxu2  ;;  %v292_v4 = vpop.f32.mrf.mxu0 }
  0xc6   :  { %v347_v3 = vpop.f32.mrf.mxu3  ;;  %v311_v6 = vpop.f32.mrf.mxu1  ;;  %v374_v7 = vmax.f32 %v372_v62, %v373_v0  ;;  %v371_v40 = vmax.f32 %v369_v28, %v370_v35 }
  0xc7   :  { %v312_v8 = vadd.f32 %v311_v6, %v292_v4  ;;  %v348_v20 = vadd.f32 %v347_v3, %v328_v1 }
  0xc8   :  { %v375_v12 = vrot.slane %v374_v7, 2  ;;  %v399_v46 = vadd.f32 %v395_v41, %v371_v40 }
  0xc9   :  { %v363_v10 = vsel %vm356_vm0, %v312_v8, -3.4028235e+38 }
  0xca   :  { %v379_v11 = vmax.f32 %v310_v5, %v363_v10  ;;  %v376_v19 = vmax.f32 %v374_v7, %v375_v12  ;;  %v403_v51 = vmax.f32 %v399_v46, 0.0 }
  0xcc   :  { %v380_v13 = vrot.slane %v379_v11, 4  ;;  %v377_v25 = vrot.slane %v376_v19, 1 }
  0xcd   :  { %v330_v14 = vpop.f32.mrf.mxu2 }
  0xce   :  { %v349_v16 = vpop.f32.mrf.mxu3  ;;  %v381_v17 = vmax.f32 %v379_v11, %v380_v13  ;;  %v378_v31 = vmax.f32 %v376_v19, %v377_v25 }
  0xcf   :  { %v350_v18 = vadd.f32 %v349_v16, %v330_v14 }
  0xd0   :  { %v382_v21 = vrot.slane %v381_v17, 2  ;;  %v400_v37 = vadd.f32 %v396_v32, %v378_v31 }
  0xd1   :  { %v364_v22 = vsel %vm356_vm0, %v350_v18, -3.4028235e+38 }
  0xd2   :  { %v386_v24 = vmax.f32 %v348_v20, %v364_v22  ;;  %v383_v26 = vmax.f32 %v381_v17, %v382_v21  ;;  %v404_v43 = vmax.f32 %v400_v37, 0.0 }
  0xd4   :  { %v387_v27 = vrot.slane %v386_v24, 4  ;;  %v384_v33 = vrot.slane %v383_v26, 1  ;;  %v411_v48 = vrot.slane %v404_v43, 6 }
  0xd6   :  { %v388_v29 = vmax.f32 %v386_v24, %v387_v27  ;;  %v385_v38 = vmax.f32 %v383_v26, %v384_v33  ;;  %v414_v54 = vsel %vm413_vm1, %v403_v51, %v411_v48 }
  0xd8   :  { %v389_v34 = vrot.slane %v388_v29, 2  ;;  %v401_v44 = vadd.f32 %v395_v41, %v385_v38 }
  0xda   :  { %v390_v36 = vmax.f32 %v388_v29, %v389_v34  ;;  %v405_v49 = vmax.f32 %v401_v44, 0.0 }
  0xdc   :  { %v391_v39 = vrot.slane %v390_v36, 1 }
  0xde   :  { %v392_v42 = vmax.f32 %v390_v36, %v391_v39 }
  0xe0   :  { %v402_v45 = vadd.f32 %v396_v32, %v392_v42 }
  0xe2   :  { %v406_v47 = vmax.f32 %v402_v45, 0.0 }
  0xe4   :  { %v412_v50 = vrot.slane %v406_v47, 6 }
  0xe6   :  { %v415_v52 = vsel %vm413_vm1, %v405_v49, %v412_v50 }
  0xe7   :  { %v420_v53 = vrot.slane %v415_v52, 7 }
  0xe9   :  { %v422_v55 = vsel %vm421_vm2, %v420_v53, %v414_v54 }
  0xea   :  { %v424_v56 = vsel %vm423_vm3, %v420_v53, %v422_v55 }
  0xeb   :  { %v426_v57 = vsel %vm425_vm4, %v420_v53, %v424_v56 }
  0xec   :  { %v428_v58 = vsel %vm427_vm5, %v420_v53, %v426_v57 }
  0xed   :  { %430 = vst [vmem:[#allocation8] sm:$0xf] %v428_v58 }
  0xee   :  { %441 = dma.vmem_to_hbm [thread:$0]  %s437_s2, 64, %s439_s30, [#allocation4]  }
  0xef   :  { %735 = dma.done.wait [#allocation4], 64  }
  0xf0   :  { %736 = vsyncadd [#allocation4], 4294967232 }
  0xf1   :  { %446 = vsyncpa [#allocation3], 1 }
  0xf2   :  { %447 = vsyncpa [#allocation6], 1 }
  0xf3   :  { %448 = vsyncpa [#allocation4], 1 }

</bundles_post_ra>
